<compile_context>
chip_gen: v5e
topology: v5e:2x2
jax: 0.10.0
libtpu: 0.0.40
codegen_flags: <defaults>
</compile_context>

<pallas_src>
import numpy as np
import jax
import jax.numpy as jnp
from jax.experimental import pallas as pl
from jax.experimental.pallas import tpu as pltpu


def _bilinear_matrix(out_size: int, in_size: int) -> np.ndarray:
    """Row-stochastic (out_size, in_size) bilinear interpolation matrix."""
    i = np.arange(out_size, dtype=np.float64)
    src = (i + 0.5) * (in_size / out_size) - 0.5
    src = np.clip(src, 0.0, in_size - 1.0)
    lo = np.floor(src).astype(np.int32)
    hi = np.minimum(lo + 1, in_size - 1)
    frac = (src - lo).astype(np.float32)
    m = np.zeros((out_size, in_size), dtype=np.float32)
    rows = np.arange(out_size)
    np.add.at(m, (rows, lo), 1.0 - frac)
    np.add.at(m, (rows, hi), frac)
    return m


def _pick_tk(w_pad: int) -> int:
    """Largest K-tile (multiple of 128, <= 512) dividing the padded width."""
    for tk in (512, 256, 128):
        if w_pad % tk == 0:
            return tk
    return w_pad  # unreachable: w_pad is always a multiple of 128


def _minmax_resize_kernel(x_ref, a_ref, b_ref, corr_ref, o_ref,
                          mn_scr, mx_scr, off_scr):
    # x_ref:    (H, tk)       f32  streamed slab of the current channel
    # a_ref:    (sz_r, H)     bf16 row-resize matrix   (grid-invariant)
    # b_ref:    (W_pad, sz_p) bf16 col-resize matrix   (grid-invariant, resident)
    # corr_ref: (sz_r, sz_p)  f32  A @ 1 @ B            (grid-invariant)
    # o_ref:    (sz_r, sz_p)  f32  output block == accumulator (resident over K)
    # mn_scr/mx_scr: (1, tk)  f32  running per-lane min / max
    # off_scr:  (1, 1)        f32  coarse per-channel offset (first pixel)
    k = pl.program_id(1)
    tk = x_ref.shape[1]

    @pl.when(k == 0)
    def _init():
        o_ref[...] = jnp.zeros_like(o_ref)
        mn_scr[...] = jnp.full_like(mn_scr, jnp.inf)
        mx_scr[...] = jnp.full_like(mx_scr, -jnp.inf)
        off_scr[...] = x_ref[0:1, 0:1]

    x = x_ref[...]                                           # (H, tk) f32

    # Running min/max: cheap per-step sublane fold only (no full scalar
    # reduce / (1,1) RMW per step); collapse to a scalar once at finalize.
    mn_scr[...] = jnp.minimum(mn_scr[...], jnp.min(x, axis=0, keepdims=True))
    mx_scr[...] = jnp.maximum(mx_scr[...], jnp.max(x, axis=0, keepdims=True))

    # bf16 MXU matmuls with f32 accumulation.  Subtract the coarse offset
    # before the cast so bf16 quantization acts on the channel's dynamic
    # range, not its absolute magnitude; the offset is folded back via corr.
    off = off_scr[...]                                       # (1, 1) f32
    xb = (x - off).astype(jnp.bfloat16)                      # (H, tk) bf16
    koff = pl.multiple_of(k * tk, tk)
    b_slab = b_ref[pl.ds(koff, tk), :]                       # (tk, sz_p) bf16
    tmp = jnp.dot(a_ref[...], xb, preferred_element_type=jnp.float32)  # (sz_r, tk)
    o_ref[...] += jnp.dot(tmp.astype(jnp.bfloat16), b_slab,
                          preferred_element_type=jnp.float32)

    @pl.when(k == pl.num_programs(1) - 1)
    def _finalize():
        mn = jnp.min(mn_scr[...], keepdims=True)             # (1, 1)
        mx = jnp.max(mx_scr[...], keepdims=True)             # (1, 1)
        inv_d = 1.0 / (mx - mn + 1e-6)
        # acc == A @ (x - off) @ B, corr == A @ 1 @ B (exact for stored bf16
        # A/B), hence (acc - (mn - off) * corr) * inv_d == A @ ((x-mn)/d) @ B.
        o_ref[...] = (o_ref[...] - (mn - off) * corr_ref[...]) * inv_d


def min_max_normalize_with_size(x: jax.Array, sz: int = 224) -> jax.Array:
    """x: (C, H, W) float -> (C, sz, sz) float32."""
    x = jnp.asarray(x, jnp.float32)
    C, H, W = x.shape
    sz_r = ((sz + 7) // 8) * 8            # sublane-padded output rows
    sz_p = ((sz + 127) // 128) * 128      # lane-padded output cols

    # Pad W to a lane multiple with edge replication: min/max are unchanged
    # (duplicated values) and the matching zero rows in B contribute nothing.
    W_pad = max(((W + 127) // 128) * 128, 128)
    if W_pad != W:
        x = jnp.pad(x, ((0, 0), (0, 0), (0, W_pad - W)), mode="edge")
    tk = _pick_tk(W_pad)
    num_k = W_pad // tk

    a_np = np.zeros((sz_r, H), dtype=np.float32)
    a_np[:sz, :] = _bilinear_matrix(sz, H)          # resize rows (H -> sz)
    b_np = np.zeros((W_pad, sz_p), dtype=np.float32)
    b_np[:W, :sz] = _bilinear_matrix(sz, W).T       # resize cols (W -> sz)
    a = jnp.asarray(a_np, dtype=jnp.bfloat16)
    b = jnp.asarray(b_np, dtype=jnp.bfloat16)
    # Exact A @ 1_{HxW} @ B for the *stored bf16* matrices (padded B rows are
    # zero so they do not affect the column sums).
    corr = (a.astype(jnp.float32).sum(axis=1, keepdims=True) *
            b.astype(jnp.float32).sum(axis=0, keepdims=True))  # (sz_r, sz_p)

    out_p = pl.pallas_call(
        _minmax_resize_kernel,
        out_shape=jax.ShapeDtypeStruct((C, sz_r, sz_p), jnp.float32),
        grid_spec=pltpu.PrefetchScalarGridSpec(
            num_scalar_prefetch=0,
            grid=(C, num_k),                      # reduction (K) axis last
            in_specs=[
                pl.BlockSpec((pl.Squeezed(), H, tk), lambda c, k: (c, 0, k)),
                pl.BlockSpec((sz_r, H), lambda c, k: (0, 0)),       # A resident
                pl.BlockSpec((W_pad, sz_p), lambda c, k: (0, 0)),   # B resident
                pl.BlockSpec((sz_r, sz_p), lambda c, k: (0, 0)),    # corr resident
            ],
            out_specs=pl.BlockSpec((pl.Squeezed(), sz_r, sz_p),
                                   lambda c, k: (c, 0, 0)),
            scratch_shapes=[
                pltpu.VMEM((1, tk), jnp.float32),   # running min (per lane)
                pltpu.VMEM((1, tk), jnp.float32),   # running max (per lane)
                pltpu.VMEM((1, 1), jnp.float32),    # coarse per-channel offset
            ],
        ),
        compiler_params=pltpu.CompilerParams(
            dimension_semantics=("parallel", "arbitrary"),
            vmem_limit_bytes=32 * 1024 * 1024),
    )(x, a, b, corr)

    return out_p[:, :sz, :sz]


def _reference(x: jax.Array, sz: int) -> jax.Array:
    """Pure-JAX f32 reference: normalize-then-resize (original module order)."""
    mn = jnp.min(x, axis=(1, 2), keepdims=True)
    mx = jnp.max(x, axis=(1, 2), keepdims=True)
    xn = (x - mn) / (mx - mn + 1e-6)
    a = jnp.asarray(_bilinear_matrix(sz, x.shape[1]))
    b = jnp.asarray(_bilinear_matrix(sz, x.shape[2]).T)
    return jnp.einsum("oh,chw,ws->cos", a, xn, b, precision="highest")


if __name__ == "__main__":
    key = jax.random.PRNGKey(0)

    # Test 1: small CHW image (W < 128 exercises the lane-padding path).
    C, H, W, sz = 4, 16, 16, 32
    x = jax.random.uniform(key, (C, H, W), jnp.float32, minval=-3.0, maxval=5.0)
    out = jax.block_until_ready(min_max_normalize_with_size(x, sz=sz))
    assert out.shape == (C, sz, sz), out.shape
    # bf16 interpolation weights + bf16 x-slab => loose absolute tolerance.
    np.testing.assert_allclose(np.asarray(out), np.asarray(_reference(x, sz)),
                               rtol=2e-2, atol=3e-2)

    # Test 2: multi-step K-tiled accumulation path (W_pad // tk == 3).
    C2, H2, W2, sz2 = 3, 128, 384, 64
    x2 = jax.random.uniform(jax.random.PRNGKey(1), (C2, H2, W2), jnp.float32,
                            minval=-2.0, maxval=4.0)
    out2 = jax.block_until_ready(min_max_normalize_with_size(x2, sz=sz2))
    assert out2.shape == (C2, sz2, sz2), out2.shape
    np.testing.assert_allclose(np.asarray(out2), np.asarray(_reference(x2, sz2)),
                               rtol=2e-2, atol=3e-2)

    print("KERNEL_OK")
</pallas_src>

<mosaic_0001>
module attributes {stable_mosaic.version = 11 : i64} {
  func.func @_minmax_resize_kernel(%arg0: i32, %arg1: i32, %arg2: memref<1x16x128xf32, #tpu.memory_space<vmem>>, %arg3: memref<32x16xbf16, #tpu.memory_space<vmem>>, %arg4: memref<128x128xbf16, #tpu.memory_space<vmem>>, %arg5: memref<32x128xf32, #tpu.memory_space<vmem>>, %arg6: memref<1x32x128xf32, #tpu.memory_space<vmem>>, %arg7: memref<1x128xf32, #tpu.memory_space<vmem>>, %arg8: memref<1x128xf32, #tpu.memory_space<vmem>>, %arg9: memref<1x1xf32, #tpu.memory_space<vmem>>) attributes {dimension_semantics = [#tpu.dimension_semantics<parallel>, #tpu.dimension_semantics<arbitrary>], iteration_bounds = array<i64: 4, 1>, scalar_prefetch = 0 : i64, scratch_operands = 3 : i64, tpu.core_type = #tpu.core_type<tc>, window_params = [{transform_indices = @transform_0, window_bounds = array<i64: 1, 16, 128>}, {pipeline_mode = #tpu.pipeline_mode<synchronous>, transform_indices = @transform_1, window_bounds = array<i64: 32, 16>}, {pipeline_mode = #tpu.pipeline_mode<synchronous>, transform_indices = @transform_2, window_bounds = array<i64: 128, 128>}, {pipeline_mode = #tpu.pipeline_mode<synchronous>, transform_indices = @transform_3, window_bounds = array<i64: 32, 128>}, {transform_indices = @transform_4, window_bounds = array<i64: 1, 32, 128>}]} {
    %c0_i32 = arith.constant 0 : i32
    %0 = arith.cmpi eq, %arg1, %c0_i32 : i32
    %1 = arith.extui %0 : i1 to i32
    %c0_i32_0 = arith.constant 0 : i32
    %2 = arith.cmpi ne, %1, %c0_i32_0 : i32
    scf.if %2 {
      %cst_27 = arith.constant 0.000000e+00 : f32
      %36 = vector.broadcast %cst_27 : f32 to vector<32x128xf32>
      %c0_28 = arith.constant 0 : index
      %c0_29 = arith.constant 0 : index
      %c0_30 = arith.constant 0 : index
      %37 = vector.load %arg6[%c0_28, %c0_29, %c0_30] : memref<1x32x128xf32, #tpu.memory_space<vmem>>, vector<1x32x128xf32>
      %38 = vector.shape_cast %37 : vector<1x32x128xf32> to vector<32x128xf32>
      %39 = vector.shape_cast %36 : vector<32x128xf32> to vector<1x32x128xf32>
      tpu.vector_store %arg6[%c0_28, %c0_29, %c0_30], %39 {strides = array<i32>} : memref<1x32x128xf32, #tpu.memory_space<vmem>>, vector<1x32x128xf32>,
      %cst_31 = arith.constant 0x7F800000 : f32
      %40 = vector.broadcast %cst_31 : f32 to vector<1x128xf32>
      %c0_32 = arith.constant 0 : index
      %c0_33 = arith.constant 0 : index
      %41 = vector.load %arg7[%c0_32, %c0_33] : memref<1x128xf32, #tpu.memory_space<vmem>>, vector<1x128xf32>
      tpu.vector_store %arg7[%c0_32, %c0_33], %40 {strides = array<i32>} : memref<1x128xf32, #tpu.memory_space<vmem>>, vector<1x128xf32>,
      %cst_34 = arith.constant 0xFF800000 : f32
      %42 = vector.broadcast %cst_34 : f32 to vector<1x128xf32>
      %c0_35 = arith.constant 0 : index
      %c0_36 = arith.constant 0 : index
      %43 = vector.load %arg8[%c0_35, %c0_36] : memref<1x128xf32, #tpu.memory_space<vmem>>, vector<1x128xf32>
      tpu.vector_store %arg8[%c0_35, %c0_36], %42 {strides = array<i32>} : memref<1x128xf32, #tpu.memory_space<vmem>>, vector<1x128xf32>,
      %c0_37 = arith.constant 0 : index
      %c0_38 = arith.constant 0 : index
      %c0_39 = arith.constant 0 : index
      %44 = vector.load %arg2[%c0_37, %c0_38, %c0_39] : memref<1x16x128xf32, #tpu.memory_space<vmem>>, vector<1x1x1xf32>
      %45 = vector.shape_cast %44 : vector<1x1x1xf32> to vector<1x1xf32>
      %c0_40 = arith.constant 0 : index
      %c0_41 = arith.constant 0 : index
      %46 = vector.load %arg9[%c0_40, %c0_41] : memref<1x1xf32, #tpu.memory_space<vmem>>, vector<1x1xf32>
      tpu.vector_store %arg9[%c0_40, %c0_41], %45 {strides = array<i32>} : memref<1x1xf32, #tpu.memory_space<vmem>>, vector<1x1xf32>,
    } else {
    }
    %c0 = arith.constant 0 : index
    %c0_1 = arith.constant 0 : index
    %c0_2 = arith.constant 0 : index
    %3 = vector.load %arg2[%c0, %c0_1, %c0_2] : memref<1x16x128xf32, #tpu.memory_space<vmem>>, vector<1x16x128xf32>
    %4 = vector.shape_cast %3 : vector<1x16x128xf32> to vector<16x128xf32>
    %c0_3 = arith.constant 0 : index
    %c0_4 = arith.constant 0 : index
    %5 = vector.load %arg7[%c0_3, %c0_4] : memref<1x128xf32, #tpu.memory_space<vmem>>, vector<1x128xf32>
    %cst = arith.constant dense<0x7F800000> : vector<128xf32>
    %6 = vector.multi_reduction <minimumf>, %4, %cst [0] : vector<16x128xf32> to vector<128xf32>
    %7 = vector.shape_cast %6 : vector<128xf32> to vector<1x128xf32>
    %8 = arith.minimumf %5, %7 : vector<1x128xf32>
    %c0_5 = arith.constant 0 : index
    %c0_6 = arith.constant 0 : index
    %9 = vector.load %arg7[%c0_5, %c0_6] : memref<1x128xf32, #tpu.memory_space<vmem>>, vector<1x128xf32>
    tpu.vector_store %arg7[%c0_5, %c0_6], %8 {strides = array<i32>} : memref<1x128xf32, #tpu.memory_space<vmem>>, vector<1x128xf32>,
    %c0_7 = arith.constant 0 : index
    %c0_8 = arith.constant 0 : index
    %10 = vector.load %arg8[%c0_7, %c0_8] : memref<1x128xf32, #tpu.memory_space<vmem>>, vector<1x128xf32>
    %cst_9 = arith.constant dense<0xFF800000> : vector<128xf32>
    %11 = vector.multi_reduction <maximumf>, %4, %cst_9 [0] : vector<16x128xf32> to vector<128xf32>
    %12 = vector.shape_cast %11 : vector<128xf32> to vector<1x128xf32>
    %13 = arith.maximumf %10, %12 : vector<1x128xf32>
    %c0_10 = arith.constant 0 : index
    %c0_11 = arith.constant 0 : index
    %14 = vector.load %arg8[%c0_10, %c0_11] : memref<1x128xf32, #tpu.memory_space<vmem>>, vector<1x128xf32>
    tpu.vector_store %arg8[%c0_10, %c0_11], %13 {strides = array<i32>} : memref<1x128xf32, #tpu.memory_space<vmem>>, vector<1x128xf32>,
    %c0_12 = arith.constant 0 : index
    %c0_13 = arith.constant 0 : index
    %15 = vector.load %arg9[%c0_12, %c0_13] : memref<1x1xf32, #tpu.memory_space<vmem>>, vector<1x1xf32>
    %16 = vector.broadcast %15 : vector<1x1xf32> to vector<16x128xf32>
    %17 = arith.subf %4, %16 : vector<16x128xf32>
    %18 = arith.truncf %17 : vector<16x128xf32> to vector<16x128xbf16>
    %c128_i32 = arith.constant 128 : i32
    %19 = arith.muli %arg1, %c128_i32 : i32
    %20 = tpu.assume_multiple %19, 128 : i32
    %21 = arith.index_cast %20 : i32 to index
    %c0_14 = arith.constant 0 : index
    %22 = vector.load %arg4[%21, %c0_14] : memref<128x128xbf16, #tpu.memory_space<vmem>>, vector<128x128xbf16>
    %c0_15 = arith.constant 0 : index
    %c0_16 = arith.constant 0 : index
    %23 = vector.load %arg3[%c0_15, %c0_16] : memref<32x16xbf16, #tpu.memory_space<vmem>>, vector<32x16xbf16>
    %cst_17 = arith.constant dense<0.000000e+00> : vector<32x128xf32>
    %24 = tpu.matmul %23, %18, %cst_17 {dimension_numbers = #tpu.dot_dimension_numbers<[1], [0], [0], [1], [0, 0, 1, 1], [], []>} : vector<32x16xbf16>, vector<16x128xbf16>, vector<32x128xf32> -> vector<32x128xf32>
    %c0_18 = arith.constant 0 : index
    %c0_19 = arith.constant 0 : index
    %c0_20 = arith.constant 0 : index
    %25 = vector.load %arg6[%c0_18, %c0_19, %c0_20] : memref<1x32x128xf32, #tpu.memory_space<vmem>>, vector<1x32x128xf32>
    %26 = vector.shape_cast %25 : vector<1x32x128xf32> to vector<32x128xf32>
    %27 = arith.truncf %24 : vector<32x128xf32> to vector<32x128xbf16>
    %cst_21 = arith.constant dense<0.000000e+00> : vector<32x128xf32>
    %28 = tpu.matmul %27, %22, %cst_21 {dimension_numbers = #tpu.dot_dimension_numbers<[1], [0], [0], [1], [0, 0, 1, 1], [], []>} : vector<32x128xbf16>, vector<128x128xbf16>, vector<32x128xf32> -> vector<32x128xf32>
    %29 = arith.addf %26, %28 : vector<32x128xf32>
    %c0_22 = arith.constant 0 : index
    %c0_23 = arith.constant 0 : index
    %c0_24 = arith.constant 0 : index
    %30 = vector.load %arg6[%c0_22, %c0_23, %c0_24] : memref<1x32x128xf32, #tpu.memory_space<vmem>>, vector<1x32x128xf32>
    %31 = vector.shape_cast %30 : vector<1x32x128xf32> to vector<32x128xf32>
    %32 = vector.shape_cast %29 : vector<32x128xf32> to vector<1x32x128xf32>
    tpu.vector_store %arg6[%c0_22, %c0_23, %c0_24], %32 {strides = array<i32>} : memref<1x32x128xf32, #tpu.memory_space<vmem>>, vector<1x32x128xf32>,
    %c0_i32_25 = arith.constant 0 : i32
    %33 = arith.cmpi eq, %arg1, %c0_i32_25 : i32
    %34 = arith.extui %33 : i1 to i32
    %c0_i32_26 = arith.constant 0 : i32
    %35 = arith.cmpi ne, %34, %c0_i32_26 : i32
    scf.if %35 {
      %c0_27 = arith.constant 0 : index
      %c0_28 = arith.constant 0 : index
      %36 = vector.load %arg7[%c0_27, %c0_28] : memref<1x128xf32, #tpu.memory_space<vmem>>, vector<1x128xf32>
      %37 = vector.shape_cast %36 : vector<1x128xf32> to vector<1x1x128xf32>
      %cst_29 = arith.constant dense<0x7F800000> : vector<1xf32>
      %38 = vector.multi_reduction <minimumf>, %37, %cst_29 [1, 2] : vector<1x1x128xf32> to vector<1xf32>
      %39 = vector.shape_cast %38 : vector<1xf32> to vector<1x1x1xf32>
      %40 = vector.extract %39[0, 0, 0] : f32 from vector<1x1x1xf32>
      %41 = vector.broadcast %40 : f32 to vector<1x1xf32>
      %c0_30 = arith.constant 0 : index
      %c0_31 = arith.constant 0 : index
      %42 = vector.load %arg8[%c0_30, %c0_31] : memref<1x128xf32, #tpu.memory_space<vmem>>, vector<1x128xf32>
      %43 = vector.shape_cast %42 : vector<1x128xf32> to vector<1x1x128xf32>
      %cst_32 = arith.constant dense<0xFF800000> : vector<1xf32>
      %44 = vector.multi_reduction <maximumf>, %43, %cst_32 [1, 2] : vector<1x1x128xf32> to vector<1xf32>
      %45 = vector.shape_cast %44 : vector<1xf32> to vector<1x1x1xf32>
      %46 = vector.extract %45[0, 0, 0] : f32 from vector<1x1x1xf32>
      %47 = vector.broadcast %46 : f32 to vector<1x1xf32>
      %48 = arith.subf %47, %41 : vector<1x1xf32>
      %cst_33 = arith.constant 9.99999997E-7 : f32
      %49 = vector.broadcast %cst_33 : f32 to vector<1x1xf32>
      %50 = arith.addf %48, %49 : vector<1x1xf32>
      %cst_34 = arith.constant 1.000000e+00 : f32
      %51 = vector.broadcast %cst_34 : f32 to vector<1x1xf32>
      %52 = arith.divf %51, %50 : vector<1x1xf32>
      %c0_35 = arith.constant 0 : index
      %c0_36 = arith.constant 0 : index
      %c0_37 = arith.constant 0 : index
      %53 = vector.load %arg6[%c0_35, %c0_36, %c0_37] : memref<1x32x128xf32, #tpu.memory_space<vmem>>, vector<1x32x128xf32>
      %54 = vector.shape_cast %53 : vector<1x32x128xf32> to vector<32x128xf32>
      %55 = arith.subf %41, %15 : vector<1x1xf32>
      %c0_38 = arith.constant 0 : index
      %c0_39 = arith.constant 0 : index
      %56 = vector.load %arg5[%c0_38, %c0_39] : memref<32x128xf32, #tpu.memory_space<vmem>>, vector<32x128xf32>
      %57 = vector.broadcast %55 : vector<1x1xf32> to vector<32x128xf32>
      %58 = arith.mulf %57, %56 : vector<32x128xf32>
      %59 = arith.subf %54, %58 : vector<32x128xf32>
      %60 = vector.broadcast %52 : vector<1x1xf32> to vector<32x128xf32>
      %61 = arith.mulf %59, %60 : vector<32x128xf32>
      %c0_40 = arith.constant 0 : index
      %c0_41 = arith.constant 0 : index
      %c0_42 = arith.constant 0 : index
      %62 = vector.load %arg6[%c0_40, %c0_41, %c0_42] : memref<1x32x128xf32, #tpu.memory_space<vmem>>, vector<1x32x128xf32>
      %63 = vector.shape_cast %62 : vector<1x32x128xf32> to vector<32x128xf32>
      %64 = vector.shape_cast %61 : vector<32x128xf32> to vector<1x32x128xf32>
      tpu.vector_store %arg6[%c0_40, %c0_41, %c0_42], %64 {strides = array<i32>} : memref<1x32x128xf32, #tpu.memory_space<vmem>>, vector<1x32x128xf32>,
    } else {
    }
    return
  }
  func.func @transform_0(%arg0: i32, %arg1: i32) -> (i32, i32, i32) {
    %c0_i32 = arith.constant 0 : i32
    %c0_i32_0 = arith.constant 0 : i32
    return %arg0, %c0_i32, %arg1 : i32, i32, i32
  }
  func.func @transform_1(%arg0: i32, %arg1: i32) -> (i32, i32) {
    %c0_i32 = arith.constant 0 : i32
    %c0_i32_0 = arith.constant 0 : i32
    %c0_i32_1 = arith.constant 0 : i32
    return %c0_i32, %c0_i32_0 : i32, i32
  }
  func.func @transform_2(%arg0: i32, %arg1: i32) -> (i32, i32) {
    %c0_i32 = arith.constant 0 : i32
    %c0_i32_0 = arith.constant 0 : i32
    %c0_i32_1 = arith.constant 0 : i32
    return %c0_i32, %c0_i32_0 : i32, i32
  }
  func.func @transform_3(%arg0: i32, %arg1: i32) -> (i32, i32) {
    %c0_i32 = arith.constant 0 : i32
    %c0_i32_0 = arith.constant 0 : i32
    %c0_i32_1 = arith.constant 0 : i32
    return %c0_i32, %c0_i32_0 : i32, i32
  }
  func.func @transform_4(%arg0: i32, %arg1: i32) -> (i32, i32, i32) {
    %c0_i32 = arith.constant 0 : i32
    %c0_i32_0 = arith.constant 0 : i32
    %c0_i32_1 = arith.constant 0 : i32
    return %arg0, %c0_i32, %c0_i32_0 : i32, i32, i32
  }
}

</mosaic_0001>

<bundles_post_ra>
// kernel: tpu_custom_call.1
= control target key start
LH: loop header
LB: loop body
LE: loop exit
PB: predicated region body
PF: predicated region fallthrough
CT: control target
= control target key end

     0   :  { %s1204_s0 = inlined_call_operand.hbm [shape: f32[4,16,128], index: 0, kind: input, shape index: {}]   ;;  %s1205_s1 = inlined_call_operand.vmem [shape: bf16[32,16], index: 1, kind: input, shape index: {}]   ;;  %s1206_s2 = inlined_call_operand.hbm [shape: bf16[128,128], index: 2, kind: input, shape index: {}]   ;;  %s1207_s3 = inlined_call_operand.hbm [shape: f32[32,128], index: 3, kind: input, shape index: {}]   ;;  %s1208_s4 = inlined_call_operand.hbm [shape: f32[4,32,128], index: 4, kind: output, shape index: {}]  }
   0x1   :  { %1210 = sst [smem:[#allocation15_spill]] %s1206_s2 }
   0x2   :  { %9 = vsyncpa [#allocation6], 0 }
   0x3   :  { %11 = vsyncpa [#allocation6 + $0x1], 0 }
   0x4   :  { %12 = vsyncpa [#allocation9], 0 }
   0x5   :  { %13 = vsyncpa [#allocation7], 0 }
   0x6   :  { %15 = vsyncpa [#allocation7 + $0x1], 0  ;;  %s1047_s15 = smov 0   ;;  %s1049_s16 = smov 0  }
   0x7   :  { %s1051_s17 = smov 0   ;;  %s1053_s18 = smov 0  }
   0x8   :  { %s1055_s19 = smov 0   ;;  %s1057_s20 = smov 0  }
   0x9 LB: > { %s650_s21 = sadd.s32 4294967295, %s1009_s20   ;;  %s651_s22 = sadd.s32 4294967294, %s1009_s20   ;;  %s1009_s20 = sphi %s1057_s20, %s21_s20   ;;  %s1005_s19 = sphi %s1055_s19, %s1222_s19   ;;  %s1001_s18 = sphi %s1053_s18, %s1221_s18   ;;  %s997_s17 = sphi %s1051_s17, %s1220_s17   ;;  %s993_s16 = sphi %s1049_s16, %s1219_s16   ;;  %s989_s15 = sphi %s1047_s15, %s1218_s15  }
   0xa   : > { %p55_p0 = scmp.ne.s32.totalorder %s993_s16, %s989_s15  ;;  %p1083_p1 = scmp.eq.s32.totalorder %s650_s21, 0 }
   0xb   : > { %p148_p2 = scmp.eq.s32.totalorder %s651_s22, 3  ;;  %p652_p4 = scmp.ge.s32.totalorder %s1009_s20, 1 }
   0xc   : > { %p1089_p3 = por %p1083_p1, %p55_p0  ;;  %p155_p6 = scmp.lt.s32.totalorder %s1009_s20, 5 }
   0xd   : > { %p1094_p5 = por %p148_p2, %p55_p0  ;;  %s1214_s2 = sld [smem:[#allocation15_spill]] }
   0xe   : > { %p1102_p7 = pnand %p652_p4, %p155_p6  ;;  %s1011_s30 = smov [#allocation8]  }
   0xf   : > { %s171_s5 = sshll.u32 %s1011_s30, 4  ;;  %s183_s8 = sshll.u32 %s1207_s3, 4  ;;  %s172_s5 = int_to_ptr.vmem [resolvable:$true] %s171_s5  ;;  %s184_s8 = int_to_ptr.hbm [resolvable:$true] %s183_s8 }
  0x10   : > { %p747_p8 = pneg %p1102_p7  ;;  %s1012_s9 = smov 64  }
  0x11   : > { %s1013_s10 = smov 4   ;;  %s1014_s11 = smov [#allocation10]  }
  0x12   : > { %p748_p9 = pnand %p747_p8, %p1083_p1  ;;  %s185_s12 = sshll.u32 %s1014_s11, 4  ;;  %s186_s12 = int_to_ptr.vmem [resolvable:$true] %s185_s12 }
  0x13   : > { %s169_s28 = sshll.u32 %s1214_s2, 4  ;;  %s1209_s13 = smov 128   ;;  %s170_s28 = int_to_ptr.hbm [resolvable:$true] %s169_s28 }
  0x14   : > { %750 = dma.hbm_to_vmem [thread:$0]  (!%p748_p9), %s170_s28, 1024, %s172_s5, [#allocation9], %s1012_s9, %s1012_s9, %s1013_s10  }
  0x15   : > { %s1016_s14 = smov 8   ;;  %p142_p10 = scmp.eq.s32.totalorder %s650_s21, 3 }
  0x16   : > { %753 = dma.hbm_to_vmem [thread:$0]  (!%p748_p9), %s184_s8, 512, %s186_s12, [#allocation9], %s1209_s13, %s1209_s13, %s1016_s14  }
  0x17   : > { %s33_s22 = sadd.s32 1, %s1005_s19  ;;  %s42_s26 = sadd.s32 1, %s997_s17 }
  0x18   : > { %p35_p11 = scmp.ge.s32.totalorder %s33_s22, 4  ;;  %p49_p12 = scmp.ne.s32.totalorder %s997_s17, %s993_s16 }
  0x19   : > { %p50_p13 = scmp.eq.s32.totalorder %s1009_s20, 0  ;;  %p764_p2 = scmp.lt.s32.totalorder %s1009_s20, 4 }
  0x1a   : > { %s1224_s22 = smov (%p35_p11, %s33_s22), 0  ;;  %p1125_p0 = por %p142_p10, %p49_p12 }
  0x1b   : > { %s37_s28 = ssub.s32 %s1005_s19, %s1224_s22  ;;  %s199_s30 = sand.u32 1, %s997_s17  }
  0x1c   : > { %p40_p4 = scmp.eq.s32.totalorder %s37_s28, 0  ;;  %p51_p6 = por %p50_p13, %p49_p12 }
  0x1d   : > { %s656_s5 = sshll.u32 %s199_s30, 4  ;;  %s711_s21 = sshll.u32 %s1005_s19, 4 }
  0x1e   : > { %s1135_s6 = scalar_select %p40_p4, %s997_s17, %s42_s26  }
  0x1f   : > { %s209_s9 = scalar_lea.hbm %s1204_s0, %s711_s21  ;;  %s203_s11 = scalar_lea.vmem [#allocation5], %s656_s5 }
  0x20   : > { %s210_s10 = sshll.u32 %s209_s9, 4  ;;  %s212_s12 = sshll.u32 %s203_s11, 4  ;;  %s211_s10 = int_to_ptr.hbm [resolvable:$true] %s210_s10  ;;  %s213_s12 = int_to_ptr.vmem [resolvable:$true] %s212_s12 }
  0x21   : > { %p755_p8 = pnand %p764_p2, %p51_p6  ;;  %s200_s13 = scalar_lea.sflag [#allocation6], %s199_s30 }
  0x22   : > { %s1217_s2 = smov 128   ;;  %224 = sbr.rel (%p1102_p7) target bundleno = 474 (0x1da), region = 36 }
  0x23   : > { %757 = dma.hbm_to_vmem [thread:$0]  (!%p755_p8), %s211_s10, 256, %s213_s12, %s200_s13, %s1217_s2, %s1217_s2, %s1016_s14  }
  0x24   : > { %s1148_s26 = sand.u32 (!%p1102_p7), 1, %s993_s16  }
  0x25   : > { %s660_s28 = sshll.u32 (!%p1102_p7), %s1148_s26, 4  ;;  %s227_s5 = scalar_lea.sflag (!%p1102_p7), [#allocation6], %s1148_s26 }
  0x26   : > { %s230_s21 = scalar_lea.vmem (!%p1102_p7), [#allocation5], %s660_s28 }
  0x27   : > { %976 = dma.done.wait (%p1089_p3), %s227_s5, 256  }
  0x28   : > { %978 = vsyncadd (%p1089_p3), %s227_s5, 4294967040 }
  0x29   : > { %980 = dma.done.wait (%p1083_p1), [#allocation9], 1536  }
  0x2a   : > { %982 = vsyncadd (%p1083_p1), [#allocation9], 4294965760  ;;  %v1017_v0 = vmov 0   ;;  %v1018_v1 = vmov inf   ;;  %vm278_vm0 = vcmask 0   ;;  %v280_v3 = vld [vmem:[%s230_s21] sm:$0xff] }
  0x2b   : > { %828 = vset.pattern.permute.xlu0 %v1017_v0  ;;  %275 = vst [vmem:[#allocation2] sm:$0x1] %v1018_v1  ;;  %829 = vset.pattern.permute.xlu1 %v1017_v0  ;;  %v277_v2 = vld [vmem:[%s230_s21] sm:$0x1]  ;;  %v281_v4 = vld [vmem:[%s230_s21 + $0x8] sm:$0xff]  ;;  %v1019_v16 = vmov -inf  }
  0x2c   : > { %279 = vst.msk [vmem:[#allocation4] sm:$0x1] %vm278_vm0, %v277_v2  ;;  %v283_v5 = vmin.f32 %v280_v3, %v281_v4  ;;  %v293_v15 = vmax.f32 %v280_v3, %v281_v4  ;;  %vm458_vm1 = vcmask 1040384   ;;  %v720_v33 = vld [vmem:[%s1205_s1] sm:$0xff]  ;;  %vm347_vm2 = vcmask 130048   ;;  %v721_v34 = vld [vmem:[%s1205_s1 + $0x8] sm:$0xff] }
  0x2d   : > { %276 = vst [vmem:[#allocation3] sm:$0x1] %v1019_v16  ;;  %v719_v35 = vld [vmem:[#allocation8 + $0x38] sm:$0xff]  ;;  %v718_v36 = vld [vmem:[#allocation8 + $0x30] sm:$0xff]  ;;  %v717_v37 = vld [vmem:[#allocation8 + $0x28] sm:$0xff]  ;;  %s663_s30 = sshll.u32 %s1148_s26, 5 }
  0x2e   : > { %v284_v6 = vrot.slane %v283_v5, 4  ;;  %v294_v17 = vrot.slane %v293_v15, 4  ;;  %427 = vmatpush.bf16.msra.mxu1 %v719_v35  ;;  %723 = vmatpush.bf16.msra.mxu2 %v719_v35  ;;  %v716_v38 = vld [vmem:[#allocation8 + $0x20] sm:$0xff]  ;;  %v715_v41 = vld [vmem:[#allocation8 + $0x18] sm:$0xff]  ;;  %v714_v54 = vld [vmem:[#allocation8 + $0x10] sm:$0xff]  ;;  %s265_s7 = scalar_lea.vmem [#allocation11], %s663_s30 }
  0x2f   : > { %v713_v55 = vld [vmem:[#allocation8 + $0x8] sm:$0xff]  ;;  %v712_v56 = vld [vmem:[#allocation8] sm:$0xff]  ;;  %s722_s8 = sshll.u32 %s1001_s18, 5  ;;  %s543_s12 = sshll.u32 %s265_s7, 4  ;;  %s544_s12 = int_to_ptr.vmem [resolvable:$true] %s543_s12 }
  0x30   : > { %v285_v7 = vmin.f32 %v283_v5, %v284_v6  ;;  %v295_v18 = vmax.f32 %v293_v15, %v294_v17  ;;  %s542_s11 = scalar_lea.hbm %s1208_s4, %s722_s8  ;;  %s531_s5 = scalar_lea.sflag [#allocation7], %s1148_s26 }
  0x31   : > { %s545_s28 = sshll.u32 %s542_s11, 4  ;;  %s943_s24 = scalar_lea.hbm %s1208_s4, 128  ;;  %s546_s28 = int_to_ptr.hbm [resolvable:$true] %s545_s28 }
  0x32   : > { %v286_v8 = vrot.slane %v285_v7, 2  ;;  %v282_v12 = vld [vmem:[#allocation2] sm:$0x1]  ;;  %v296_v19 = vrot.slane %v295_v18, 2  ;;  %428 = vmatpush.bf16.msra.mxu1 %v718_v36  ;;  %724 = vmatpush.bf16.msra.mxu2 %v718_v36  ;;  %s937_s21 = sshra.s32 %s546_s28, 4  ;;  %s938_s21 = int_to_ptr.hbm [resolvable:$true] %s937_s21 }
  0x33   : > { %v830_v9 = vld [vmem:[#allocation4] ss:$0 sm:$0xff]  ;;  %s939_s18 = scalar_lea.hbm %s938_s21, 32  ;;  %p944_p9 = scmp.lt.s32.totalorder %s938_s21, %s1208_s4 }
  0x34   : > { %v287_v10 = vmin.f32 %v285_v7, %v286_v8  ;;  %306 = vperm.xlu0 %828, %v830_v9   ;;  %v297_v20 = vmax.f32 %v295_v18, %v296_v19  ;;  %v292_v22 = vld [vmem:[#allocation3] sm:$0x1]  ;;  %v302_v57 = vld [vmem:[#allocation4] sm:$0x1]  ;;  %p940_p1 = scmp.ne.s32.totalorder %s938_s21, %s939_s18  ;;  %p945_p10 = scmp.lt.s32.totalorder %s943_s24, %s939_s18 }
  0x36   : > { %v288_v11 = vrot.slane %v287_v10, 1  ;;  %v298_v21 = vrot.slane %v297_v20, 1  ;;  %429 = vmatpush.bf16.msra.mxu1 %v717_v37  ;;  %725 = vmatpush.bf16.msra.mxu2 %v717_v37  ;;  %p941_p3 = pnand %p940_p1, %p1125_p0  ;;  %p946_p11 = por %p945_p10, %p944_p9 }
  0x38   : > { %v289_v13 = vmin.f32 %v287_v10, %v288_v11  ;;  %v299_v23 = vmax.f32 %v297_v20, %v298_v21  ;;  %v504_v11 = vld [vmem:[#allocation10] sm:$0xff]  ;;  %v505_v20 = vld [vmem:[#allocation10 + $0x8] sm:$0xff]  ;;  %p942_p7 = pneg %p941_p3 }
  0x3a   : > { %v290_v14 = vmin.f32 %v282_v12, %v289_v13  ;;  %v300_v24 = vmax.f32 %v292_v22, %v299_v23  ;;  %430 = vmatpush.bf16.msra.mxu1 %v716_v38  ;;  %726 = vmatpush.bf16.msra.mxu2 %v716_v38  ;;  %p947_p12 = pnand %p946_p11, %p942_p7 }
  0x3c   : > { %291 = vst [vmem:[#allocation2] sm:$0x1] %v290_v14 }
  0x3d   : > { %301 = vst [vmem:[#allocation3] sm:$0x1] %v300_v24 }
  0x3e   : > { %431 = vmatpush.bf16.msra.mxu1 %v715_v41  ;;  %727 = vmatpush.bf16.msra.mxu2 %v715_v41 }
  0x42   : > { %432 = vmatpush.bf16.msra.mxu1 %v714_v54  ;;  %728 = vmatpush.bf16.msra.mxu2 %v714_v54 }
  0x43   : > { %v457_v27 = vld [vmem:[#allocation2] sm:$0x1] }
  0x44   : > { %v470_v25 = vld [vmem:[#allocation3] sm:$0x1]  ;;  %v459_v28 = vsel %vm458_vm1, %v457_v27, inf  ;;  %v506_v27 = vld [vmem:[#allocation10 + $0x10] sm:$0xff] }
  0x45   : > { %v471_v26 = vsel %vm458_vm1, %v470_v25, -inf }
  0x46   : > { %472 = vmax.xlane.f32.xlu1 %v471_v26  ;;  %433 = vmatpush.bf16.msra.mxu1 %v713_v55 }
  0x47   : > { %729 = vmatpush.bf16.msra.mxu2 %v713_v55 }
  0x4a   : > { %434 = vmatpush.bf16.msra.mxu1 %v712_v56 }
  0x4b   : > { %730 = vmatpush.bf16.msra.mxu2 %v712_v56 }
  0x5e   : > { %460 = vmin.xlane.f32.xlu0 %v459_v28 }
  0xa6   : > { %v307_v29 = vpop.permute.xlu0 %306 }
  0xa7   : > { %v309_v30 = vsub.f32 %v280_v3, %v307_v29  ;;  %v310_v31 = vsub.f32 %v281_v4, %v307_v29 }
  0xa9   : > { %v311_v32 = vpack.c.bf16 %v310_v31, %v309_v30 }
  0xab   : > { %361 = vmatpush.bf16.msra.mxu0 %v311_v32  ;;  %v507_v32 = vld [vmem:[#allocation10 + $0x18] sm:$0xff] }
  0xae   : > { %672 = vmatmul.msk.bf16.vlgmr.msra.gmra.mxu0 %vm347_vm2, %v720_v33 }
  0xb9   : > { %v473_v39 = vpop.xlane.xlu1 %472 }
  0xba   : > { %v474_v40 = vrot.slane %v473_v39, 4 }
  0xbc   : > { %v475_v42 = vmax.f32 %v473_v39, %v474_v40 }
  0xbe   : > { %673 = vmatmul.msk.bf16.gmra.mxu0 %vm347_vm2, %v721_v34  ;;  %v476_v43 = vrot.slane %v475_v42, 2 }
  0xc0   : > { %v477_v46 = vmax.f32 %v475_v42, %v476_v43 }
  0xc2   : > { %v478_v49 = vrot.slane %v477_v46, 1 }
  0xc4   : > { %v479_v52 = vmax.f32 %v477_v46, %v478_v49 }
  0xd1   : > { %v461_v44 = vpop.xlane.xlu0 %460 }
  0xd2   : > { %v462_v45 = vrot.slane %v461_v44, 4 }
  0xd4   : > { %v463_v47 = vmin.f32 %v461_v44, %v462_v45 }
  0xd6   : > { %v464_v48 = vrot.slane %v463_v47, 2 }
  0xd8   : > { %v465_v50 = vmin.f32 %v463_v47, %v464_v48 }
  0xda   : > { %v466_v51 = vrot.slane %v465_v50, 1 }
  0xdc   : > { %v467_v53 = vmin.f32 %v465_v50, %v466_v51 }
  0xde   : > { %731 = vpush %v467_v53 }
  0xdf   : > { %733 = vpush %v479_v52 }
 0x10f   : > { %s732_s13 = spop %731 }
 0x110   : > { %v469_v58 = vstv %s732_s13  ;;  %s734_s14 = spop %733 }
 0x111   : > { %v503_v59 = vsub.f32 %v469_v58, %v302_v57  ;;  %v481_v3 = vstv %s734_s14 }
 0x112   : > { %v482_v4 = vsub.f32 %v481_v3, %v469_v58 }
 0x113   : > { %v509_v60 = vperm.slane %v503_v59, 0 }
 0x114   : > { %v483_v5 = vadd.f32 1e-06, %v482_v4 }
 0x115   : > { %511 = vperm.xlu1 %829, %v509_v60  }
 0x116   : > { %831 = vrcp.f32 %v483_v5  ;;  %vm489_vm3 = vweird.f32 %v483_v5  ;;  %v495_v10 = vand.u32 2147483648, %v483_v5  ;;  %v493_v13 = vand.u32 2147483647, %v483_v5 }
 0x118   : > { %v496_v16 = vor.u32 1.1754944e-38, %v495_v10  ;;  %vm494_vm6 = vcmp.eq.f32.partialorder %v493_v13, 8.507059e+37 }
 0x11c   : > { %v832_v6 = vpop.eup %831 }
 0x11d   : > { %v485_v7 = vmul.f32 %v832_v6, %v483_v5  ;;  %vm490_vm4 = vweird.f32 %v832_v6 }
 0x11e   : > { %vm491_vm5 = vmor %vm489_vm3, %vm490_vm4 }
 0x11f   : > { %v486_v8 = vsub.f32 1.0, %v485_v7 }
 0x121   : > { %v487_v9 = vmul.f32 %v832_v6, %v486_v8 }
 0x123   : > { %v488_v14 = vadd.f32 %v832_v6, %v487_v9 }
 0x125   : > { %v492_v18 = vsel %vm491_vm5, %v832_v6, %v488_v14 }
 0x126   : > { %v497_v21 = vsel %vm494_vm6, %v496_v16, %v492_v18 }
 0x12b   : > { %v363_v61 = vpop.f32.mrf.mxu0 }
 0x133   : > { %v365_v62 = vpop.f32.mrf.mxu0 }
 0x134   : > { %v377_v63 = vpack.c.bf16 %v365_v62, %v363_v61 }
 0x136   : > { %435 = vmatmul.bf16.vlgmr.msra.gmra.mxu1 %v377_v63 }
 0x13b   : > { %v368_v0 = vpop.f32.mrf.mxu0 }
 0x143   : > { %v370_v1 = vpop.f32.mrf.mxu0 }
 0x144   : > { %v378_v2 = vpack.c.bf16 %v370_v1, %v368_v0 }
 0x146   : > { %440 = vmatmul.bf16.vlgmr.msra.gmra.mxu2 %v378_v2 }
 0x187   : > { %v512_v12 = vpop.permute.xlu1 %511 }
 0x188   : > { %v514_v15 = vmul.f32 %v512_v12, %v504_v11  ;;  %v515_v23 = vmul.f32 %v512_v12, %v505_v20  ;;  %v516_v28 = vmul.f32 %v512_v12, %v506_v27  ;;  %v517_v34 = vmul.f32 %v512_v12, %v507_v32 }
 0x1b3   : > { %v436_v17 = vpop.f32.mrf.mxu1 }
 0x1b4   : > { %v518_v19 = vsub.f32 %v436_v17, %v514_v15 }
 0x1b6   : > { %v522_v22 = vmul.f32 %v518_v19, %v497_v21 }
 0x1b8   : > { %526 = vst [vmem:[%s265_s7] sm:$0xff] %v522_v22 }
 0x1bb   : > { %v438_v24 = vpop.f32.mrf.mxu1 }
 0x1bc   : > { %v519_v25 = vsub.f32 %v438_v24, %v515_v23 }
 0x1be   : > { %v523_v26 = vmul.f32 %v519_v25, %v497_v21 }
 0x1c0   : > { %527 = vst [vmem:[%s265_s7 + $0x8] sm:$0xff] %v523_v26 }
 0x1c9   : > { %v441_v29 = vpop.f32.mrf.mxu2 }
 0x1ca   : > { %v520_v30 = vsub.f32 %v441_v29, %v516_v28 }
 0x1cc   : > { %v524_v31 = vmul.f32 %v520_v30, %v497_v21 }
 0x1ce   : > { %528 = vst [vmem:[%s265_s7 + $0x10] sm:$0xff] %v524_v31 }
 0x1d1   : > { %v443_v33 = vpop.f32.mrf.mxu2 }
 0x1d2   : > { %v521_v35 = vsub.f32 %v443_v33, %v517_v34 }
 0x1d4   : > { %v525_v36 = vmul.f32 %v521_v35, %v497_v21 }
 0x1d6   : > { %529 = vst [vmem:[%s265_s7 + $0x18] sm:$0xff] %v525_v36 }
 0x1d7   : > { %950 = shalt.err (!%p947_p12)
}
 0x1d8   : > { %s1020_s26 = smov 128   ;;  %s1021_s14 = smov 8  }
 0x1d9   : > { %745 = dma.vmem_to_hbm [thread:$0]  (%p1125_p0), %s544_s12, 512, %s546_s28, %s531_s5, %s1020_s26, %s1020_s26, %s1021_s14  }
 0x1da PF: > { %p767_p13 = scmp.ge.s32.totalorder %s1009_s20, 2  ;;  %s560_s30 = sand.u32 1, %s989_s15  }
 0x1db   : > { %s561_s7 = scalar_lea.sflag [#allocation7], %s560_s30 }
 0x1dc   : > { %p759_p2 = pnand %p767_p13, %p1094_p5 }
 0x1de   : > { %p760_p4 = pneg %p759_p2 }
 0x1e0   : > { %984 = dma.done.wait (%p760_p4), %s561_s7, 512  }
 0x1e1   : > { %986 = vsyncadd (%p760_p4), %s561_s7, 4294966784  ;;  %s21_s20 = sadd.s32 1, %s1009_s20   ;;  %s1218_s15 = smov %s993_s16 }
 0x1e2   : > { %p18_p6 = scmp.ge.s32.totalorder %s21_s20, 6   ;;  %s1219_s16 = smov %s997_s17 }
 0x1e3   : > { %s1220_s17 = smov %s1135_s6  ;;  %s1221_s18 = smov %s1005_s19 }
 0x1e4   : > { %s1222_s19 = smov %s1224_s22  ;;  %20 = sbr.rel (!%p18_p6) target bundleno = 9 (0x9), region = 98 }
 0x1e9   :  { %567 = vsyncpa [#allocation6], 1 }
 0x1ea   :  { %569 = vsyncpa [#allocation6 + $0x1], 1 }
 0x1eb   :  { %570 = vsyncpa [#allocation9], 1 }
 0x1ec   :  { %571 = vsyncpa [#allocation7], 1 }
 0x1ed   :  { %573 = vsyncpa [#allocation7 + $0x1], 1 }

</bundles_post_ra>
